<compile_context>
chip_gen: v7x
topology: tpu7x:2x2x1
jax: 0.10.0
libtpu: 0.0.40
codegen_flags: <defaults>
</compile_context>

<pallas_src>
import functools

import jax
import jax.numpy as jnp
from jax import lax
from jax.experimental import pallas as pl
from jax.experimental.pallas import tpu as pltpu


def _round_up(x, m):
    return (x + m - 1) // m * m


def _linear_norm_kernel(x_ref, w_ref, p_ref, o_ref, acc_ref, *,
                        eps, n_valid, n_extra, compute_dtype):
    # x_ref: (TM, TK) activation dtype (cast to compute dtype right before the dot)
    # w_ref: (TK, Np) compute dtype, already [K, N] (wrapper-side transpose)
    # p_ref: (3, Np) f32 -- rows: bias, gamma, beta
    # o_ref: (TM, Np) out dtype
    # acc_ref: (TM, Np) f32 accumulator scratch (persists across the K grid axis)
    k = pl.program_id(1)

    @pl.when(k == 0)
    def _():
        acc_ref[...] = jnp.zeros_like(acc_ref)

    acc_ref[...] += jnp.dot(
        x_ref[...].astype(compute_dtype), w_ref[...],
        preferred_element_type=jnp.float32)

    @pl.when(k == pl.num_programs(1) - 1)
    def _():
        # Bias + ReLU. Padded N columns have zero weight column and zero bias,
        # so they are exactly 0 after ReLU.
        y = jnp.maximum(acc_ref[...] + p_ref[0:1, :], 0.0)

        # LayerNorm over the real feature width n_valid (biased variance).
        inv_n = jnp.float32(1.0 / n_valid)
        mean = jnp.sum(y, axis=-1, keepdims=True) * inv_n
        centered = y - mean
        ssq = jnp.sum(centered * centered, axis=-1, keepdims=True)
        if n_extra:
            # Each of the n_extra zero-padded columns contributed exactly mean^2;
            # subtract it in closed form instead of an iota/compare/select mask.
            ssq = ssq - jnp.float32(n_extra) * (mean * mean)
        var = ssq * inv_n

        # gamma * rsqrt(var + eps) fused scale (rsqrt on the EUP slot).
        out = centered * (p_ref[1:2, :] * lax.rsqrt(var + eps)) + p_ref[2:3, :]

        # Dropout(p=0.1) in eval mode is identity.
        o_ref[...] = out.astype(o_ref.dtype)


def linear_and_norm(x, weight, bias, gamma, beta, *, eps=1e-12,
                    compute_dtype=jnp.bfloat16, block_m=None, block_k=None,
                    out_dtype=None):
    """x: [B, S, dim_in]; weight: [dim_out, dim_in] (PyTorch layout); bias/gamma/beta: [dim_out]."""
    B, S, K = x.shape
    N, Kw = weight.shape
    assert Kw == K, (Kw, K)
    M = B * S
    if out_dtype is None:
        out_dtype = x.dtype

    csize = jnp.dtype(compute_dtype).itemsize
    xsize = jnp.dtype(x.dtype).itemsize
    osize = jnp.dtype(out_dtype).itemsize

    k_pad = _round_up(K, 128)
    n_pad = _round_up(N, 128)

    # ---- Generation-aware VMEM budget --------------------------------------
    try:
        vmem_cap = int(pltpu.get_tpu_info().vmem_capacity_bytes)
    except Exception:
        vmem_cap = 64 * 2**20          # conservative fallback (v7x-sized)
    vmem_usable = int(vmem_cap * 0.75)

    # ---- K tiling: resident whole weight when it fits, streamed slabs else --
    w_budget = int(vmem_usable * 0.4)
    if block_k is not None:
        tk = min(_round_up(block_k, 128), k_pad)
    elif k_pad * n_pad * csize <= w_budget:
        tk = k_pad
    else:
        tk = max((w_budget // (2 * n_pad * csize)) // 128 * 128, 128)
    k_steps = pl.cdiv(k_pad, tk)
    k_pad = tk * k_steps               # tile K exactly

    # ---- Row tile: 16-aligned for packed bf16; shrink until the budget fits --
    m_align = 16 if csize < 4 else 8
    if block_m is None:
        block_m = 512 if vmem_cap > 96 * 2**20 else 256
    tm = min(_round_up(block_m, m_align), _round_up(M, m_align))

    def vmem_need(tm_):
        w_bufs = 1 if k_steps == 1 else 2
        return (w_bufs * tk * n_pad * csize      # weight slab(s)
                + 2 * tm_ * tk * xsize           # x tile, double-buffered
                + 2 * tm_ * n_pad * osize        # out tile, double-buffered
                + 3 * n_pad * 4                  # packed bias/gamma/beta (1 buffer)
                + tm_ * n_pad * 4                # f32 accumulator scratch
                + 3 * tm_ * n_pad * 4)           # in-kernel f32 temporaries

    while tm > m_align and vmem_need(tm) > vmem_usable:
        tm = max(_round_up(tm // 2, m_align), m_align)
    m_pad = _round_up(M, tm)

    # ---- Operand prep --------------------------------------------------------
    # Activations: skip the materialized pad pass when already aligned; the
    # compute-dtype cast happens in-kernel on the tile (no extra HBM pass).
    x2d = x.reshape(M, K)
    if m_pad != M or k_pad != K:
        x2d = jnp.pad(x2d, ((0, m_pad - M), (0, k_pad - K)))

    # Weight pre-transposed once to [K, N] so the MXU consumes [TM,K] x [K,N].
    w = jnp.pad(weight, ((0, n_pad - N), (0, k_pad - K))).T.astype(compute_dtype)

    # bias / gamma / beta packed into a single (3, n_pad) f32 operand.
    params = jnp.stack([
        jnp.pad(bias.astype(jnp.float32), (0, n_pad - N)),
        jnp.pad(gamma.astype(jnp.float32), (0, n_pad - N)),
        jnp.pad(beta.astype(jnp.float32), (0, n_pad - N)),
    ])

    kernel = functools.partial(
        _linear_norm_kernel, eps=float(eps), n_valid=int(N),
        n_extra=int(n_pad - N), compute_dtype=compute_dtype)

    # Grid-invariant operands get a single pipeline buffer; the streamed weight
    # slab (k_steps > 1) keeps the default double buffer.
    if k_steps == 1:
        w_spec = pl.BlockSpec((tk, n_pad), lambda i, k: (0, 0),
                              pipeline_mode=pl.Buffered(1))
    else:
        w_spec = pl.BlockSpec((tk, n_pad), lambda i, k: (k, 0))
    p_spec = pl.BlockSpec((3, n_pad), lambda i, k: (0, 0),
                          pipeline_mode=pl.Buffered(1))

    vmem_limit = int(min(max(int(vmem_need(tm) * 1.25), 16 * 2**20), vmem_usable))

    out2d = pl.pallas_call(
        kernel,
        out_shape=jax.ShapeDtypeStruct((m_pad, n_pad), out_dtype),
        grid_spec=pltpu.PrefetchScalarGridSpec(
            num_scalar_prefetch=0,
            grid=(m_pad // tm, k_steps),
            in_specs=[
                pl.BlockSpec((tm, tk), lambda i, k: (i, k)),   # x rows, pipelined
                w_spec,                                        # weight
                p_spec,                                        # bias/gamma/beta
            ],
            out_specs=pl.BlockSpec((tm, n_pad), lambda i, k: (i, 0)),
            scratch_shapes=[pltpu.VMEM((tm, n_pad), jnp.float32)],
        ),
        compiler_params=pltpu.CompilerParams(
            # M axis parallel (v7x 2-TC sharding; harmless elsewhere), K reduction
            # axis arbitrary (accumulator carried across it).
            dimension_semantics=("parallel", "arbitrary"),
            vmem_limit_bytes=vmem_limit,
        ),
    )(x2d, w, params)

    return out2d[:M, :N].reshape(B, S, N)


def _reference(x, weight, bias, gamma, beta, eps=1e-12):
    y = jnp.einsum("bsk,nk->bsn", x, weight) + bias
    y = jnp.maximum(y, 0.0)
    mean = jnp.mean(y, axis=-1, keepdims=True)
    var = jnp.mean((y - mean) ** 2, axis=-1, keepdims=True)
    return (y - mean) / jnp.sqrt(var + eps) * gamma + beta


def _make_inputs(key, B, S, dim_in, dim_out):
    kx, kw, kb, kg, kbeta = jax.random.split(key, 5)
    x = jax.random.normal(kx, (B, S, dim_in), dtype=jnp.float32)
    weight = jax.random.normal(kw, (dim_out, dim_in), dtype=jnp.float32) * (1.0 / dim_in ** 0.5)
    bias = jax.random.normal(kb, (dim_out,), dtype=jnp.float32) * 0.01
    gamma = jnp.ones((dim_out,), dtype=jnp.float32) + 0.1 * jax.random.normal(kg, (dim_out,))
    beta = 0.1 * jax.random.normal(kbeta, (dim_out,), dtype=jnp.float32)
    return x, weight, bias, gamma, beta


if __name__ == "__main__":
    key = jax.random.PRNGKey(0)
    k1, k2 = jax.random.split(key)

    # --- Test 1: small shapes, f32 compute path (tight check of kernel logic) ---
    B, S, dim_in, dim_out = 2, 8, 32, 64
    x, weight, bias, gamma, beta = _make_inputs(k1, B, S, dim_in, dim_out)
    ref = _reference(x, weight, bias, gamma, beta)

    out_f32 = jax.block_until_ready(
        linear_and_norm(x, weight, bias, gamma, beta, compute_dtype=jnp.float32))
    assert out_f32.shape == (B, S, dim_out), out_f32.shape
    assert jnp.allclose(out_f32, ref, atol=5e-3, rtol=5e-3), \
        float(jnp.max(jnp.abs(out_f32 - ref)))

    # --- Test 2: bf16 MXU fast path (default), looser tolerance -----------------
    out_bf16 = jax.block_until_ready(linear_and_norm(x, weight, bias, gamma, beta))
    assert out_bf16.shape == (B, S, dim_out), out_bf16.shape
    assert jnp.allclose(out_bf16, ref, atol=5e-2, rtol=5e-2), \
        float(jnp.max(jnp.abs(out_bf16 - ref)))

    # --- Test 3: forced K-tiling (accumulator + epilogue path), N not %128 ------
    dim_in2, dim_out2 = 256, 192
    x2, weight2, bias2, gamma2, beta2 = _make_inputs(k2, B, S, dim_in2, dim_out2)
    ref2 = _reference(x2, weight2, bias2, gamma2, beta2)
    out_kt = jax.block_until_ready(
        linear_and_norm(x2, weight2, bias2, gamma2, beta2,
                        compute_dtype=jnp.float32, block_k=128))
    assert out_kt.shape == (B, S, dim_out2), out_kt.shape
    assert jnp.allclose(out_kt, ref2, atol=5e-3, rtol=5e-3), \
        float(jnp.max(jnp.abs(out_kt - ref2)))

    print("KERNEL_OK")
</pallas_src>

<mosaic_0001>
module attributes {stable_mosaic.version = 11 : i64} {
  func.func @_linear_norm_kernel(%arg0: i32, %arg1: i32, %arg2: memref<16x128xf32, #tpu.memory_space<vmem>>, %arg3: memref<128x128xf32, #tpu.memory_space<vmem>>, %arg4: memref<3x128xf32, #tpu.memory_space<vmem>>, %arg5: memref<16x128xf32, #tpu.memory_space<vmem>>, %arg6: memref<16x128xf32, #tpu.memory_space<vmem>>) attributes {dimension_semantics = [#tpu.dimension_semantics<parallel>, #tpu.dimension_semantics<arbitrary>], iteration_bounds = array<i64: 1, 1>, scalar_prefetch = 0 : i64, scratch_operands = 1 : i64, tpu.core_type = #tpu.core_type<tc>, window_params = [{transform_indices = @transform_0, window_bounds = array<i64: 16, 128>}, {pipeline_mode = #tpu.pipeline_mode<synchronous>, transform_indices = @transform_1, window_bounds = array<i64: 128, 128>}, {pipeline_mode = #tpu.pipeline_mode<synchronous>, transform_indices = @transform_2, window_bounds = array<i64: 3, 128>}, {transform_indices = @transform_3, window_bounds = array<i64: 16, 128>}]} {
    %c0_i32 = arith.constant 0 : i32
    %0 = arith.cmpi eq, %arg1, %c0_i32 : i32
    %1 = arith.extui %0 : i1 to i32
    %c0_i32_0 = arith.constant 0 : i32
    %2 = arith.cmpi ne, %1, %c0_i32_0 : i32
    scf.if %2 {
      %cst_10 = arith.constant 0.000000e+00 : f32
      %12 = vector.broadcast %cst_10 : f32 to vector<16x128xf32>
      %c0_11 = arith.constant 0 : index
      %c0_12 = arith.constant 0 : index
      %13 = vector.load %arg6[%c0_11, %c0_12] : memref<16x128xf32, #tpu.memory_space<vmem>>, vector<16x128xf32>
      tpu.vector_store %arg6[%c0_11, %c0_12], %12 {strides = array<i32>} : memref<16x128xf32, #tpu.memory_space<vmem>>, vector<16x128xf32>,
    } else {
    }
    %c0 = arith.constant 0 : index
    %c0_1 = arith.constant 0 : index
    %3 = vector.load %arg6[%c0, %c0_1] : memref<16x128xf32, #tpu.memory_space<vmem>>, vector<16x128xf32>
    %c0_2 = arith.constant 0 : index
    %c0_3 = arith.constant 0 : index
    %4 = vector.load %arg2[%c0_2, %c0_3] : memref<16x128xf32, #tpu.memory_space<vmem>>, vector<16x128xf32>
    %c0_4 = arith.constant 0 : index
    %c0_5 = arith.constant 0 : index
    %5 = vector.load %arg3[%c0_4, %c0_5] : memref<128x128xf32, #tpu.memory_space<vmem>>, vector<128x128xf32>
    %cst = arith.constant dense<0.000000e+00> : vector<16x128xf32>
    %6 = tpu.matmul %4, %5, %cst {dimension_numbers = #tpu.dot_dimension_numbers<[1], [0], [0], [1], [0, 0, 1, 1], [], []>} : vector<16x128xf32>, vector<128x128xf32>, vector<16x128xf32> -> vector<16x128xf32>
    %7 = arith.addf %3, %6 : vector<16x128xf32>
    %c0_6 = arith.constant 0 : index
    %c0_7 = arith.constant 0 : index
    %8 = vector.load %arg6[%c0_6, %c0_7] : memref<16x128xf32, #tpu.memory_space<vmem>>, vector<16x128xf32>
    tpu.vector_store %arg6[%c0_6, %c0_7], %7 {strides = array<i32>} : memref<16x128xf32, #tpu.memory_space<vmem>>, vector<16x128xf32>,
    %c0_i32_8 = arith.constant 0 : i32
    %9 = arith.cmpi eq, %arg1, %c0_i32_8 : i32
    %10 = arith.extui %9 : i1 to i32
    %c0_i32_9 = arith.constant 0 : i32
    %11 = arith.cmpi ne, %10, %c0_i32_9 : i32
    scf.if %11 {
      %c0_10 = arith.constant 0 : index
      %c0_11 = arith.constant 0 : index
      %12 = vector.load %arg6[%c0_10, %c0_11] : memref<16x128xf32, #tpu.memory_space<vmem>>, vector<16x128xf32>
      %c0_12 = arith.constant 0 : index
      %c0_13 = arith.constant 0 : index
      %13 = vector.load %arg4[%c0_12, %c0_13] : memref<3x128xf32, #tpu.memory_space<vmem>>, vector<1x128xf32>
      %14 = vector.broadcast %13 : vector<1x128xf32> to vector<16x128xf32>
      %15 = arith.addf %12, %14 : vector<16x128xf32>
      %cst_14 = arith.constant 0.000000e+00 : f32
      %16 = vector.broadcast %cst_14 : f32 to vector<16x128xf32>
      %17 = arith.maximumf %15, %16 : vector<16x128xf32>
      %cst_15 = arith.constant dense<0.000000e+00> : vector<16xf32>
      %18 = vector.multi_reduction <add>, %17, %cst_15 [1] : vector<16x128xf32> to vector<16xf32>
      %19 = vector.shape_cast %18 : vector<16xf32> to vector<16x1xf32>
      %cst_16 = arith.constant 1.562500e-02 : f32
      %20 = vector.broadcast %cst_16 : f32 to vector<16x1xf32>
      %21 = arith.mulf %19, %20 : vector<16x1xf32>
      %22 = vector.broadcast %21 : vector<16x1xf32> to vector<16x128xf32>
      %23 = arith.subf %17, %22 : vector<16x128xf32>
      %24 = arith.mulf %23, %23 : vector<16x128xf32>
      %cst_17 = arith.constant dense<0.000000e+00> : vector<16xf32>
      %25 = vector.multi_reduction <add>, %24, %cst_17 [1] : vector<16x128xf32> to vector<16xf32>
      %26 = vector.shape_cast %25 : vector<16xf32> to vector<16x1xf32>
      %27 = arith.mulf %21, %21 : vector<16x1xf32>
      %cst_18 = arith.constant 6.400000e+01 : f32
      %28 = vector.broadcast %cst_18 : f32 to vector<16x1xf32>
      %29 = arith.mulf %28, %27 : vector<16x1xf32>
      %30 = arith.subf %26, %29 : vector<16x1xf32>
      %cst_19 = arith.constant 1.562500e-02 : f32
      %31 = vector.broadcast %cst_19 : f32 to vector<16x1xf32>
      %32 = arith.mulf %30, %31 : vector<16x1xf32>
      %c1 = arith.constant 1 : index
      %c0_20 = arith.constant 0 : index
      %33 = vector.load %arg4[%c1, %c0_20] : memref<3x128xf32, #tpu.memory_space<vmem>>, vector<1x128xf32>
      %cst_21 = arith.constant 9.99999996E-13 : f32
      %34 = vector.broadcast %cst_21 : f32 to vector<16x1xf32>
      %35 = arith.addf %32, %34 : vector<16x1xf32>
      %36 = math.rsqrt %35 : vector<16x1xf32>
      %37 = vector.broadcast %33 : vector<1x128xf32> to vector<16x128xf32>
      %38 = vector.broadcast %36 : vector<16x1xf32> to vector<16x128xf32>
      %39 = arith.mulf %37, %38 : vector<16x128xf32>
      %40 = arith.mulf %23, %39 : vector<16x128xf32>
      %c2 = arith.constant 2 : index
      %c0_22 = arith.constant 0 : index
      %41 = vector.load %arg4[%c2, %c0_22] : memref<3x128xf32, #tpu.memory_space<vmem>>, vector<1x128xf32>
      %42 = vector.broadcast %41 : vector<1x128xf32> to vector<16x128xf32>
      %43 = arith.addf %40, %42 : vector<16x128xf32>
      %c0_23 = arith.constant 0 : index
      %c0_24 = arith.constant 0 : index
      %44 = vector.load %arg5[%c0_23, %c0_24] : memref<16x128xf32, #tpu.memory_space<vmem>>, vector<16x128xf32>
      tpu.vector_store %arg5[%c0_23, %c0_24], %43 {strides = array<i32>} : memref<16x128xf32, #tpu.memory_space<vmem>>, vector<16x128xf32>,
    } else {
    }
    return
  }
  func.func @transform_0(%arg0: i32, %arg1: i32) -> (i32, i32) {
    %c0_i32 = arith.constant 0 : i32
    return %arg0, %arg1 : i32, i32
  }
  func.func @transform_1(%arg0: i32, %arg1: i32) -> (i32, i32) {
    %c0_i32 = arith.constant 0 : i32
    %c0_i32_0 = arith.constant 0 : i32
    %c0_i32_1 = arith.constant 0 : i32
    return %c0_i32, %c0_i32_0 : i32, i32
  }
  func.func @transform_2(%arg0: i32, %arg1: i32) -> (i32, i32) {
    %c0_i32 = arith.constant 0 : i32
    %c0_i32_0 = arith.constant 0 : i32
    %c0_i32_1 = arith.constant 0 : i32
    return %c0_i32, %c0_i32_0 : i32, i32
  }
  func.func @transform_3(%arg0: i32, %arg1: i32) -> (i32, i32) {
    %c0_i32 = arith.constant 0 : i32
    %c0_i32_0 = arith.constant 0 : i32
    return %arg0, %c0_i32 : i32, i32
  }
}

</mosaic_0001>

<bundles_post_ra>
// kernel: tpu_custom_call.1
= control target key start
LH: loop header
LB: loop body
LE: loop exit
PB: predicated region body
PF: predicated region fallthrough
CT: control target
= control target key end

     0   :  { %8 = vsyncpa [#allocation4], 0  ;;  %s472_s0 = inlined_call_operand.hbm [shape: f32[16,128], index: 0, kind: input, shape index: {}]   ;;  %s473_s1 = inlined_call_operand.hbm [shape: f32[128,128], index: 1, kind: input, shape index: {}]   ;;  %s474_s2 = inlined_call_operand.vmem [shape: f32[3,128], index: 2, kind: input, shape index: {}]   ;;  %s475_s3 = inlined_call_operand.hbm [shape: f32[16,128], index: 3, kind: output, shape index: {}]  }
   0x1   :  { %9 = vsyncpa [#allocation7], 0 }
   0x2   :  { %10 = vsyncpa [#allocation5], 0  ;;  %s393_s12 = smov [#allocation3]   ;;  %s321_s16 = scalar_lea.hbm %s472_s0, 256 }
   0x3   :  { %s16_s13 = sshll.u32 %s393_s12, 4  ;;  %p322_p0 = scmp.ne.s32.totalorder %s472_s0, %s321_s16  ;;  %s17_s13 = int_to_ptr.vmem [resolvable:$true] %s16_s13 }
   0x4   :  { %p325_p1 = scmp.lt.u32.totalorder %s321_s16, %s472_s0 }
   0x6   :  { %p327_p2 = pnand %p325_p1, %p322_p0 }
   0x8   :  { %330 = shalt.err (!%p327_p2)
}
   0x9   :  { %s331_s21 = scalar_lea.vmem %s17_s13, 256  ;;  %p336_p4 = scmp.lt.s32.totalorder %s17_s13, %s17_s13 }
   0xa   :  { %p332_p3 = scmp.ne.s32.totalorder %s17_s13, %s331_s21  ;;  %p337_p5 = scmp.lt.s32.totalorder %s331_s21, %s331_s21 }
   0xc   :  { %p338_p6 = por %p337_p5, %p336_p4 }
   0xe   :  { %p339_p7 = pnand %p338_p6, %p332_p3 }
  0x10   :  { %342 = shalt.err (!%p339_p7)
}
  0x11   :  { %s394_s22 = smov 128   ;;  %s395_s23 = smov 8  }
  0x12   :  { %22 = dma.hbm_to_vmem [thread:$0]  %s472_s0, 256, %s17_s13, [#allocation4], %s394_s22, %s394_s22, %s395_s23  }
  0x13   :  { %s396_s26 = smov [#allocation6]   ;;  %s343_s30 = scalar_lea.hbm %s473_s1, 2048 }
  0x14   :  { %s28_s27 = sshll.u32 %s396_s26, 4  ;;  %p344_p8 = scmp.ne.s32.totalorder %s473_s1, %s343_s30  ;;  %s29_s27 = int_to_ptr.vmem [resolvable:$true] %s28_s27 }
  0x15   :  { %p347_p9 = scmp.lt.u32.totalorder %s343_s30, %s473_s1 }
  0x17   :  { %p349_p10 = pnand %p347_p9, %p344_p8 }
  0x19   :  { %352 = shalt.err (!%p349_p10)
}
  0x1a   :  { %s353_s8 = scalar_lea.vmem %s29_s27, 2048  ;;  %p358_p12 = scmp.lt.s32.totalorder %s29_s27, %s29_s27 }
  0x1b   :  { %p354_p11 = scmp.ne.s32.totalorder %s29_s27, %s353_s8  ;;  %p359_p13 = scmp.lt.s32.totalorder %s353_s8, %s353_s8 }
  0x1d   :  { %p360_p0 = por %p359_p13, %p358_p12 }
  0x1f   :  { %p361_p1 = pnand %p360_p0, %p354_p11 }
  0x21   :  { %364 = shalt.err (!%p361_p1)
}
  0x22   :  { %34 = dma.hbm_to_vmem [thread:$0]  %s473_s1, 2048, %s29_s27, [#allocation7], %s394_s22, %s394_s22, %s395_s23  }
  0x23   :  { %387 = dma.done.wait [#allocation4], 256  }
  0x24   :  { %388 = vsyncadd [#allocation4], 4294967040 }
  0x25   :  { %389 = dma.done.wait [#allocation7], 2048  }
  0x26   :  { %390 = vsyncadd [#allocation7], 4294965248  ;;  %v53_v0 = vld [vmem:[#allocation6] sm:$0xff]  ;;  %v54_v1 = vld [vmem:[#allocation6 + $0x8] sm:$0xff]  ;;  %s397_s15 = smov [#allocation8]  }
  0x27   :  { %v55_v2 = vld [vmem:[#allocation6 + $0x10] sm:$0xff]  ;;  %v280_v3 = vpack.c.bf16 %v54_v1, %v53_v0  ;;  %v56_v4 = vld [vmem:[#allocation6 + $0x18] sm:$0xff]  ;;  %v57_v6 = vld [vmem:[#allocation6 + $0x20] sm:$0xff]  ;;  %s211_s16 = sshll.u32 %s397_s15, 4  ;;  %s212_s16 = int_to_ptr.vmem [resolvable:$true] %s211_s16 }
  0x28   :  { %v284_v5 = vpack.c.bf16 %v56_v4, %v55_v2  ;;  %v58_v7 = vld [vmem:[#allocation6 + $0x28] sm:$0xff]  ;;  %v51_v9 = vld [vmem:[#allocation3] sm:$0xff]  ;;  %v60_v11 = vld [vmem:[#allocation6 + $0x38] sm:$0xff]  ;;  %s365_s17 = scalar_lea.vmem %s212_s16, 256  ;;  %p370_p3 = scmp.lt.s32.totalorder %s212_s16, %s212_s16 }
  0x29   :  { %281 = vmatprep.subr.bf16.mxu0 %v280_v3  ;;  %v288_v8 = vpack.c.bf16 %v58_v7, %v57_v6  ;;  %v59_v10 = vld [vmem:[#allocation6 + $0x30] sm:$0xff]  ;;  %277 = vmatprep.mubr.f32.mxu0 %v51_v9  ;;  %v61_v13 = vld [vmem:[#allocation6 + $0x40] sm:$0xff]  ;;  %v62_v14 = vld [vmem:[#allocation6 + $0x48] sm:$0xff]  ;;  %p366_p2 = scmp.ne.s32.totalorder %s212_s16, %s365_s17  ;;  %p371_p4 = scmp.lt.s32.totalorder %s365_s17, %s365_s17 }
  0x2a   :  { %283 = vmatpush3.bf16.msra.mxu0 %v280_v3  ;;  %v292_v12 = vpack.c.bf16 %v60_v11, %v59_v10  ;;  %v296_v15 = vpack.c.bf16 %v62_v14, %v61_v13  ;;  %v63_v16 = vld [vmem:[#allocation6 + $0x50] sm:$0xff]  ;;  %v64_v17 = vld [vmem:[#allocation6 + $0x58] sm:$0xff]  ;;  %v65_v19 = vld [vmem:[#allocation6 + $0x60] sm:$0xff] }
  0x2b   :  { %285 = vmatprep.subr.bf16.mxu0 %v284_v5  ;;  %v300_v18 = vpack.c.bf16 %v64_v17, %v63_v16  ;;  %v66_v20 = vld [vmem:[#allocation6 + $0x68] sm:$0xff]  ;;  %v67_v22 = vld [vmem:[#allocation6 + $0x70] sm:$0xff]  ;;  %v68_v23 = vld [vmem:[#allocation6 + $0x78] sm:$0xff]  ;;  %p372_p5 = por %p371_p4, %p370_p3 }
  0x2c   :  { %v304_v21 = vpack.c.bf16 %v66_v20, %v65_v19  ;;  %v308_v24 = vpack.c.bf16 %v68_v23, %v67_v22  ;;  %v52_v25 = vld [vmem:[#allocation3 + $0x8] sm:$0xff]  ;;  %v224_v26 = vld [vmem:[%s474_s2] ss:$0 sm:$0xff]  ;;  %v225_v53 = vld [vmem:[%s474_s2 + $0x1] ss:$0 sm:$0xff] }
  0x2d   :  { %v226_v56 = vld [vmem:[%s474_s2 + $0x2] ss:$0 sm:$0xff]  ;;  %p373_p6 = pnand %p372_p5, %p366_p2 }
  0x2e   :  { %287 = vmatpush3.bf16.msra.mxu0 %v284_v5 }
  0x2f   :  { %289 = vmatprep.subr.bf16.mxu0 %v288_v8 }
  0x32   :  { %291 = vmatpush3.bf16.msra.mxu0 %v288_v8 }
  0x33   :  { %293 = vmatprep.subr.bf16.mxu0 %v292_v12 }
  0x36   :  { %295 = vmatpush3.bf16.msra.mxu0 %v292_v12 }
  0x37   :  { %297 = vmatprep.subr.bf16.mxu0 %v296_v15 }
  0x3a   :  { %299 = vmatpush3.bf16.msra.mxu0 %v296_v15 }
  0x3b   :  { %301 = vmatprep.subr.bf16.mxu0 %v300_v18 }
  0x3e   :  { %303 = vmatpush3.bf16.msra.mxu0 %v300_v18 }
  0x3f   :  { %305 = vmatprep.subr.bf16.mxu0 %v304_v21 }
  0x42   :  { %307 = vmatpush3.bf16.msra.mxu0 %v304_v21 }
  0x43   :  { %309 = vmatprep.subr.bf16.mxu0 %v308_v24 }
  0x46   :  { %311 = vmatpush3.bf16.msra.mxu0 %v308_v24 }
  0x49   :  { %278 = vmatmul.mubr.f32.vlgmr.msra.gmra.mrb[0].mxu0 %v52_v25 }
 0x11c   :  { %v279_v27 = vpop.f32.mrb[0].mxu0 }
 0x11d   :  { %v135_v28 = vpop.f32.mrb[1].mxu0  ;;  %v159_v30 = vadd.f32 %v279_v27, %v224_v26 }
 0x11e   :  { %v158_v29 = vadd.f32 %v224_v26, %v135_v28 }
 0x11f   :  { %v161_v32 = vmax.f32 %v159_v30, 0.0 }
 0x120   :  { %v160_v31 = vmax.f32 %v158_v29, 0.0 }
 0x122   :  { %162 = vadd.xlane.f32.xlu0 %v160_v31 }
 0x126   :  { %164 = vadd.xlane.f32.xlu0 %v161_v32 }
 0x1af   :  { %v163_v33 = vpop.xlane.xlu0 %162 }
 0x1b0   :  { %v166_v34 = vmul.f32 0.015625, %v163_v33 }
 0x1b2   :  { %v168_v35 = vsub.f32 %v160_v31, %v166_v34  ;;  %v176_v41 = vmul.f32 %v166_v34, %v166_v34 }
 0x1b3   :  { %v165_v36 = vpop.xlane.xlu0 %164 }
 0x1b4   :  { %v167_v37 = vmul.f32 0.015625, %v165_v36  ;;  %v170_v38 = vmul.f32 %v168_v35, %v168_v35  ;;  %v178_v43 = vmul.f32 64.0, %v176_v41 }
 0x1b6   :  { %v169_v39 = vsub.f32 %v161_v32, %v167_v37  ;;  %172 = vadd.xlane.f32.xlu1 %v170_v38  ;;  %v177_v42 = vmul.f32 %v167_v37, %v167_v37 }
 0x1b8   :  { %v171_v40 = vmul.f32 %v169_v39, %v169_v39  ;;  %v179_v46 = vmul.f32 64.0, %v177_v42 }
 0x1ba   :  { %174 = vadd.xlane.f32.xlu1 %v171_v40 }
 0x243   :  { %v173_v44 = vpop.xlane.xlu1 %172 }
 0x244   :  { %v180_v45 = vsub.f32 %v173_v44, %v178_v43 }
 0x246   :  { %v182_v47 = vmul.f32 0.015625, %v180_v45 }
 0x247   :  { %v175_v48 = vpop.xlane.xlu1 %174 }
 0x248   :  { %v185_v49 = vadd.f32 1e-12, %v182_v47  ;;  %v181_v50 = vsub.f32 %v175_v48, %v179_v46 }
 0x24a   :  { %317 = vrsqrt.f32 %v185_v49  ;;  %v183_v51 = vmul.f32 0.015625, %v181_v50 }
 0x24c   :  { %v186_v52 = vadd.f32 1e-12, %v183_v51 }
 0x24e   :  { %319 = vrsqrt.f32 %v186_v52 }
 0x254   :  { %v318_v54 = vpop.eup %317 }
 0x255   :  { %v193_v55 = vmul.f32 %v318_v54, %v225_v53 }
 0x257   :  { %v195_v57 = vmul.f32 %v193_v55, %v168_v35 }
 0x258   :  { %v320_v58 = vpop.eup %319 }
 0x259   :  { %v194_v59 = vmul.f32 %v320_v58, %v225_v53  ;;  %v202_v60 = vadd.f32 %v226_v56, %v195_v57 }
 0x25b   :  { %v196_v61 = vmul.f32 %v194_v59, %v169_v39  ;;  %204 = vst [vmem:[#allocation8] sm:$0xff] %v202_v60 }
 0x25d   :  { %v203_v62 = vadd.f32 %v226_v56, %v196_v61 }
 0x25f   :  { %205 = vst [vmem:[#allocation8 + $0x8] sm:$0xff] %v203_v62 }
 0x260   :  { %376 = shalt.err (!%p373_p6)
}
 0x261   :  { %s377_s19 = scalar_lea.hbm %s475_s3, 256 }
 0x262   :  { %p378_p7 = scmp.ne.s32.totalorder %s475_s3, %s377_s19  ;;  %p381_p8 = scmp.lt.u32.totalorder %s377_s19, %s475_s3 }
 0x264   :  { %p383_p9 = pnand %p381_p8, %p378_p7 }
 0x266   :  { %386 = shalt.err (!%p383_p9)
}
 0x267   :  { %217 = dma.vmem_to_hbm [thread:$0]  %s212_s16, 256, %s475_s3, [#allocation5], %s394_s22, %s394_s22, %s395_s23  }
 0x268   :  { %391 = dma.done.wait [#allocation5], 256  }
 0x269   :  { %392 = vsyncadd [#allocation5], 4294967040 }
 0x26a   :  { %221 = vsyncpa [#allocation4], 1 }
 0x26b   :  { %222 = vsyncpa [#allocation7], 1 }
 0x26c   :  { %223 = vsyncpa [#allocation5], 1 }

</bundles_post_ra>
